<compile_context>
chip_gen: v7x
topology: tpu7x:2x2x1
jax: 0.10.0
libtpu: 0.0.40
codegen_flags: <defaults>
</compile_context>

<pallas_src>
import jax
import jax.numpy as jnp
from jax.experimental import pallas as pl
from jax.experimental.pallas import tpu as pltpu


def _round_up(x, m):
    return (x + m - 1) // m * m


def _vmem_capacity_bytes():
    try:
        return int(pltpu.get_tpu_info().vmem_capacity_bytes)
    except Exception:
        return 64 * 1024 * 1024  # conservative: v7x per-TensorCore capacity


def _compute_dtype(x_dtype, compute_dtype):
    if compute_dtype is not None:
        return jnp.dtype(compute_dtype)
    x_dtype = jnp.dtype(x_dtype)
    # bf16 is the MXU-native input dtype on v5e/v6e/v7x; default to it for f32.
    if x_dtype == jnp.dtype(jnp.float32):
        return jnp.dtype(jnp.bfloat16)
    return x_dtype


def _kv_kernel(x_ref, wk_ref, wv_ref, bv_ref, out_ref):
    # x_ref  : (tm, D)        row tile of flattened activations (compute dtype)
    # wk_ref : (1, D, D)      this layer's Wk^T, (in, out) layout
    # wv_ref : (1, D, D)      this layer's Wv^T, (in, out) layout
    # bv_ref : (1, 1, D)      this layer's V bias, f32
    # out_ref: (1, 2, tm, D)  stacked output tile: slot 0 = K, slot 1 = V
    #
    # Two half-width dots (instead of one (tm, 2D) dot): halves the live f32
    # accumulator footprint, removes the zero-bias add on the K half.
    x = x_ref[...]
    k = jnp.dot(x, wk_ref[0], preferred_element_type=jnp.float32)
    out_ref[0, 0, :, :] = k.astype(out_ref.dtype)
    v = jnp.dot(x, wv_ref[0], preferred_element_type=jnp.float32) + bv_ref[0]
    out_ref[0, 1, :, :] = v.astype(out_ref.dtype)


def prepare_cross_attn_kv_weights(wk_all, wv_all, bv_all, *, compute_dtype=None,
                                  activation_dtype=None):
    """Precompute kernel-layout weights ONCE (model-load time).

    Args:
      wk_all: [L, D, D]  per-layer k_linear weight, (out, in) layout, no bias
      wv_all: [L, D, D]  per-layer v_linear weight, (out, in) layout
      bv_all: [L, D]     per-layer v_linear bias
      compute_dtype:     optional MXU input dtype override
      activation_dtype:  dtype the activations will arrive in (used to pick the
                         default compute dtype; f32 -> bf16)

    Returns:
      (wk_t, wv_t, bv): pre-transposed (L, D_in, D_out) weights in the compute
      dtype and an f32 (L, 1, D) bias — reusable across every forward call.
    """
    ref_dtype = activation_dtype if activation_dtype is not None else wk_all.dtype
    cdt = _compute_dtype(ref_dtype, compute_dtype)
    wk_t = jnp.swapaxes(wk_all, 1, 2).astype(cdt)   # (L, D_in, D_out)
    wv_t = jnp.swapaxes(wv_all, 1, 2).astype(cdt)
    bv = bv_all.astype(jnp.float32)[:, None, :]     # (L, 1, D) f32 bias add
    return wk_t, wv_t, bv


def cross_attn_kv_prepared(xa, wk_t, wv_t, bv, n_head, *, tile_m=None):
    """Pallas CrossAttn_KV.forward on pre-prepared weights.

    Args:
      xa:     [B, S, D] encoder hidden states
      wk_t:   [L, D, D] pre-transposed Wk (from prepare_cross_attn_kv_weights)
      wv_t:   [L, D, D] pre-transposed Wv
      bv:     [L, 1, D] f32 V bias
      n_head: number of attention heads (D % n_head == 0)
      tile_m: row-tile size; None -> auto-size from VMEM capacity & dtype.

    Returns:
      list of L arrays, each [B, 2, n_head, S, D // n_head] in xa.dtype.
    """
    B, S, D = xa.shape
    L = wk_t.shape[0]
    head = D // n_head
    out_dtype = xa.dtype
    cdt = jnp.dtype(wk_t.dtype)
    in_bytes = cdt.itemsize
    out_bytes = jnp.dtype(out_dtype).itemsize

    BS = B * S
    vmem_cap = _vmem_capacity_bytes()

    if tile_m is None:
        # Per-generation / per-dtype tile sizing: bf16 compute -> up to 1024
        # rows, f32 compute -> up to 512; keep the double-buffered working set
        # within ~40% of the real per-TC VMEM (64 MiB on v7x, 128 MiB v5e/v6e).
        row_cap = 1024 if in_bytes <= 2 else 512
        w_bytes = 2 * (2 * D * D * in_bytes + D * 4)            # dbl-buffered W + bias
        per_row = 2 * D * in_bytes + 2 * 2 * D * out_bytes + 2 * D * 4
        budget = int(0.4 * vmem_cap)
        tile_m = max(16, min(row_cap, (budget - w_bytes) // max(per_row, 1)))
    tm = _round_up(min(int(tile_m), _round_up(BS, 16)), 16)
    BS_pad = _round_up(BS, tm)
    n_row_tiles = BS_pad // tm

    # Flatten and pad rows (padding rows are zeros; sliced off afterwards).
    x2 = xa.reshape(BS, D).astype(cdt)
    if BS_pad != BS:
        x2 = jnp.pad(x2, ((0, BS_pad - BS), (0, 0)))

    # Double-buffered working set, including in-kernel f32 accumulator temps.
    working = (2 * tm * D * in_bytes            # x tile
               + 2 * 2 * D * D * in_bytes       # Wk + Wv
               + 2 * D * 4                      # bias
               + 2 * 2 * tm * D * out_bytes     # out tile
               + 2 * tm * D * 4)                # f32 accumulator temporaries
    vmem_limit = int(min(max(working * 1.3, 8 * 1024 * 1024),
                         int(0.85 * vmem_cap)))

    cost = pl.CostEstimate(
        flops=int(4 * L * BS_pad * D * D),
        transcendentals=0,
        bytes_accessed=int(L * BS_pad * D * in_bytes        # x re-read per layer
                           + 2 * L * D * D * in_bytes       # weights
                           + L * D * 4                      # bias
                           + L * 2 * BS_pad * D * out_bytes),
    )

    kv = pl.pallas_call(
        _kv_kernel,
        out_shape=jax.ShapeDtypeStruct((L, 2, BS_pad, D), out_dtype),
        grid_spec=pltpu.PrefetchScalarGridSpec(
            num_scalar_prefetch=0,
            grid=(L, n_row_tiles),                           # L outer, rows inner
            in_specs=[
                pl.BlockSpec((tm, D), lambda l, i: (i, 0)),        # x row tile
                pl.BlockSpec((1, D, D), lambda l, i: (l, 0, 0)),   # Wk^T[l]
                pl.BlockSpec((1, D, D), lambda l, i: (l, 0, 0)),   # Wv^T[l]
                pl.BlockSpec((1, 1, D), lambda l, i: (l, 0, 0)),   # bv[l]
            ],
            out_specs=pl.BlockSpec((1, 2, tm, D), lambda l, i: (l, 0, i, 0)),
        ),
        compiler_params=pltpu.CompilerParams(
            # v7x megacore splits the L axis so the two TensorCores stream
            # disjoint weight sets; row tiles stay sequential per core.
            dimension_semantics=("parallel", "arbitrary"),
            vmem_limit_bytes=vmem_limit,
        ),
        cost_estimate=cost,
    )(x2, wk_t, wv_t, bv)

    # Single batched epilogue: [L, 2, BS, D] -> per-layer [B, 2, H, S, hd].
    # TODO(synk): if the downstream cross-attention consumer can take
    # [B, S, H, hd] directly (or fuse this permute), drop it — it is a full
    # extra HBM round-trip of the whole KV cache.
    kv = kv[:, :, :BS, :].reshape(L, 2, B, S, n_head, head)
    kv = kv.transpose(0, 2, 1, 4, 3, 5)
    return [kv[l] for l in range(L)]


def cross_attn_kv(xa, wk_all, wv_all, bv_all, n_head, *, tile_m=None,
                  compute_dtype=None):
    """Convenience wrapper (prepare + run).  In a real model, call
    prepare_cross_attn_kv_weights once at load time and reuse its result."""
    wk_t, wv_t, bv = prepare_cross_attn_kv_weights(
        wk_all, wv_all, bv_all,
        compute_dtype=compute_dtype, activation_dtype=xa.dtype)
    return cross_attn_kv_prepared(xa, wk_t, wv_t, bv, n_head, tile_m=tile_m)


def _reference(xa, wk_all, wv_all, bv_all, n_head):
    B, S, D = xa.shape
    head = D // n_head
    outs = []
    for l in range(wk_all.shape[0]):
        k = jnp.einsum("bsd,od->bso", xa, wk_all[l])
        v = jnp.einsum("bsd,od->bso", xa, wv_all[l]) + bv_all[l]
        k = k.reshape(B, S, n_head, head).transpose(0, 2, 1, 3)
        v = v.reshape(B, S, n_head, head).transpose(0, 2, 1, 3)
        outs.append(jnp.stack([k, v], axis=1))
    return outs


def _make_inputs(key, B, S, D, L, dtype):
    k_xa, k_wk, k_wv, k_bv = jax.random.split(key, 4)
    xa = jax.random.normal(k_xa, (B, S, D), dtype=dtype)
    wk_all = jax.random.normal(k_wk, (L, D, D), dtype=dtype) * 0.05
    wv_all = jax.random.normal(k_wv, (L, D, D), dtype=dtype) * 0.05
    bv_all = jax.random.normal(k_bv, (L, D), dtype=dtype) * 0.01
    return xa, wk_all, wv_all, bv_all


if __name__ == "__main__":
    key = jax.random.PRNGKey(0)

    # --- Test 1: small shapes, explicit f32 compute, single row tile --------
    B, S, D, H, L = 2, 8, 32, 4, 2
    xa, wk, wv, bv = _make_inputs(key, B, S, D, L, jnp.float32)
    got = jax.block_until_ready(
        cross_attn_kv(xa, wk, wv, bv, H, compute_dtype=jnp.float32))
    ref = _reference(xa, wk, wv, bv, H)
    for g, r in zip(got, ref):
        assert g.shape == (B, 2, H, S, D // H), g.shape
        assert jnp.allclose(g, r, atol=2e-4, rtol=2e-4)

    # --- Test 2: multi row-tile + ragged padding path, f32 compute ----------
    B2, S2, D2, H2, L2 = 2, 21, 32, 4, 3          # BS=42 -> padded to 48, 3 tiles
    xa2, wk2, wv2, bv2 = _make_inputs(jax.random.PRNGKey(1), B2, S2, D2, L2,
                                      jnp.float32)
    got2 = jax.block_until_ready(
        cross_attn_kv(xa2, wk2, wv2, bv2, H2, tile_m=16,
                      compute_dtype=jnp.float32))
    ref2 = _reference(xa2, wk2, wv2, bv2, H2)
    for g, r in zip(got2, ref2):
        assert g.shape == (B2, 2, H2, S2, D2 // H2), g.shape
        assert jnp.allclose(g, r, atol=2e-4, rtol=2e-4)

    # --- Test 3: default path (bf16 MXU inputs, f32 accum), prepared weights
    #             reused across two calls (model-load-time hoisting) ---------
    wk_t, wv_t, bv_f = prepare_cross_attn_kv_weights(
        wk, wv, bv, activation_dtype=xa.dtype)     # defaults to bf16 compute
    got3a = jax.block_until_ready(cross_attn_kv_prepared(xa, wk_t, wv_t, bv_f, H))
    got3b = jax.block_until_ready(cross_attn_kv_prepared(xa, wk_t, wv_t, bv_f, H))
    for g, r in zip(got3a, ref):
        assert g.shape == (B, 2, H, S, D // H), g.shape
        assert jnp.allclose(g.astype(jnp.float32), r, atol=3e-2, rtol=3e-2)
    for g, r in zip(got3b, ref):
        assert jnp.allclose(g.astype(jnp.float32), r, atol=3e-2, rtol=3e-2)

    print("KERNEL_OK")
</pallas_src>

<mosaic_0001>
module attributes {stable_mosaic.version = 11 : i64} {
  func.func @_kv_kernel(%arg0: i32, %arg1: i32, %arg2: memref<16x32xf32, #tpu.memory_space<vmem>>, %arg3: memref<1x32x32xf32, #tpu.memory_space<vmem>>, %arg4: memref<1x32x32xf32, #tpu.memory_space<vmem>>, %arg5: memref<1x1x32xf32, #tpu.memory_space<vmem>>, %arg6: memref<1x2x16x32xf32, #tpu.memory_space<vmem>>) attributes {dimension_semantics = [#tpu.dimension_semantics<parallel>, #tpu.dimension_semantics<arbitrary>], iteration_bounds = array<i64: 2, 1>, scalar_prefetch = 0 : i64, scratch_operands = 0 : i64, tpu.core_type = #tpu.core_type<tc>, window_params = [{transform_indices = @transform_0, window_bounds = array<i64: 16, 32>}, {transform_indices = @transform_1, window_bounds = array<i64: 1, 32, 32>}, {transform_indices = @transform_2, window_bounds = array<i64: 1, 32, 32>}, {transform_indices = @transform_3, window_bounds = array<i64: 1, 1, 32>}, {transform_indices = @transform_4, window_bounds = array<i64: 1, 2, 16, 32>}]} {
    %c0 = arith.constant 0 : index
    %c0_0 = arith.constant 0 : index
    %0 = vector.load %arg2[%c0, %c0_0] : memref<16x32xf32, #tpu.memory_space<vmem>>, vector<16x32xf32>
    %c0_1 = arith.constant 0 : index
    %c0_2 = arith.constant 0 : index
    %c0_3 = arith.constant 0 : index
    %1 = vector.load %arg3[%c0_1, %c0_2, %c0_3] : memref<1x32x32xf32, #tpu.memory_space<vmem>>, vector<1x32x32xf32>
    %2 = vector.shape_cast %1 : vector<1x32x32xf32> to vector<32x32xf32>
    %cst = arith.constant dense<0.000000e+00> : vector<16x32xf32>
    %3 = tpu.matmul %0, %2, %cst {dimension_numbers = #tpu.dot_dimension_numbers<[1], [0], [0], [1], [0, 0, 1, 1], [], []>} : vector<16x32xf32>, vector<32x32xf32>, vector<16x32xf32> -> vector<16x32xf32>
    %c0_4 = arith.constant 0 : index
    %c0_5 = arith.constant 0 : index
    %c0_6 = arith.constant 0 : index
    %c0_7 = arith.constant 0 : index
    %4 = vector.load %arg6[%c0_4, %c0_5, %c0_6, %c0_7] : memref<1x2x16x32xf32, #tpu.memory_space<vmem>>, vector<1x1x16x32xf32>
    %5 = vector.shape_cast %4 : vector<1x1x16x32xf32> to vector<16x32xf32>
    %6 = vector.shape_cast %3 : vector<16x32xf32> to vector<1x1x16x32xf32>
    tpu.vector_store %arg6[%c0_4, %c0_5, %c0_6, %c0_7], %6 {strides = array<i32>} : memref<1x2x16x32xf32, #tpu.memory_space<vmem>>, vector<1x1x16x32xf32>,
    %c0_8 = arith.constant 0 : index
    %c0_9 = arith.constant 0 : index
    %c0_10 = arith.constant 0 : index
    %7 = vector.load %arg4[%c0_8, %c0_9, %c0_10] : memref<1x32x32xf32, #tpu.memory_space<vmem>>, vector<1x32x32xf32>
    %8 = vector.shape_cast %7 : vector<1x32x32xf32> to vector<32x32xf32>
    %cst_11 = arith.constant dense<0.000000e+00> : vector<16x32xf32>
    %9 = tpu.matmul %0, %8, %cst_11 {dimension_numbers = #tpu.dot_dimension_numbers<[1], [0], [0], [1], [0, 0, 1, 1], [], []>} : vector<16x32xf32>, vector<32x32xf32>, vector<16x32xf32> -> vector<16x32xf32>
    %c0_12 = arith.constant 0 : index
    %c0_13 = arith.constant 0 : index
    %c0_14 = arith.constant 0 : index
    %10 = vector.load %arg5[%c0_12, %c0_13, %c0_14] : memref<1x1x32xf32, #tpu.memory_space<vmem>>, vector<1x1x32xf32>
    %11 = vector.shape_cast %10 : vector<1x1x32xf32> to vector<1x32xf32>
    %12 = vector.broadcast %11 : vector<1x32xf32> to vector<16x32xf32>
    %13 = arith.addf %9, %12 : vector<16x32xf32>
    %c0_15 = arith.constant 0 : index
    %c1 = arith.constant 1 : index
    %c0_16 = arith.constant 0 : index
    %c0_17 = arith.constant 0 : index
    %14 = vector.load %arg6[%c0_15, %c1, %c0_16, %c0_17] : memref<1x2x16x32xf32, #tpu.memory_space<vmem>>, vector<1x1x16x32xf32>
    %15 = vector.shape_cast %14 : vector<1x1x16x32xf32> to vector<16x32xf32>
    %16 = vector.shape_cast %13 : vector<16x32xf32> to vector<1x1x16x32xf32>
    tpu.vector_store %arg6[%c0_15, %c1, %c0_16, %c0_17], %16 {strides = array<i32>} : memref<1x2x16x32xf32, #tpu.memory_space<vmem>>, vector<1x1x16x32xf32>,
    return
  }
  func.func @transform_0(%arg0: i32, %arg1: i32) -> (i32, i32) {
    %c0_i32 = arith.constant 0 : i32
    %c0_i32_0 = arith.constant 0 : i32
    return %arg1, %c0_i32 : i32, i32
  }
  func.func @transform_1(%arg0: i32, %arg1: i32) -> (i32, i32, i32) {
    %c0_i32 = arith.constant 0 : i32
    %c0_i32_0 = arith.constant 0 : i32
    %c0_i32_1 = arith.constant 0 : i32
    return %arg0, %c0_i32, %c0_i32_0 : i32, i32, i32
  }
  func.func @transform_2(%arg0: i32, %arg1: i32) -> (i32, i32, i32) {
    %c0_i32 = arith.constant 0 : i32
    %c0_i32_0 = arith.constant 0 : i32
    %c0_i32_1 = arith.constant 0 : i32
    return %arg0, %c0_i32, %c0_i32_0 : i32, i32, i32
  }
  func.func @transform_3(%arg0: i32, %arg1: i32) -> (i32, i32, i32) {
    %c0_i32 = arith.constant 0 : i32
    %c0_i32_0 = arith.constant 0 : i32
    %c0_i32_1 = arith.constant 0 : i32
    return %arg0, %c0_i32, %c0_i32_0 : i32, i32, i32
  }
  func.func @transform_4(%arg0: i32, %arg1: i32) -> (i32, i32, i32, i32) {
    %c0_i32 = arith.constant 0 : i32
    %c0_i32_0 = arith.constant 0 : i32
    %c0_i32_1 = arith.constant 0 : i32
    return %arg0, %c0_i32, %arg1, %c0_i32_0 : i32, i32, i32, i32
  }
}

</mosaic_0001>

<bundles_post_ra>
// kernel: tpu_custom_call.1
= control target key start
LH: loop header
LB: loop body
LE: loop exit
PB: predicated region body
PF: predicated region fallthrough
CT: control target
= control target key end

     0   :  { %9 = vsyncpa [#allocation3], 0  ;;  %s1289_s0 = inlined_call_operand.hbm [shape: f32[16,32], index: 0, kind: input, shape index: {}]   ;;  %s1290_s1 = inlined_call_operand.hbm [shape: f32[2,32,32], index: 1, kind: input, shape index: {}]   ;;  %s1291_s2 = inlined_call_operand.hbm [shape: f32[2,32,32], index: 2, kind: input, shape index: {}]   ;;  %s1292_s3 = inlined_call_operand.vmem [shape: f32[2,1,32], index: 3, kind: input, shape index: {}]   ;;  %s1293_s4 = inlined_call_operand.hbm [shape: f32[2,2,16,32], index: 4, kind: output, shape index: {}]  }
   0x1   :  { %10 = vsyncpa [#allocation6], 0 }
   0x2   :  { %12 = vsyncpa [#allocation6 + $0x1], 0 }
   0x3   :  { %13 = vsyncpa [#allocation4], 0 }
   0x4   :  { %15 = vsyncpa [#allocation4 + $0x1], 0  ;;  %s1000_s15 = smov 0   ;;  %s1002_s16 = smov 0  }
   0x5   :  { %s1004_s17 = smov 0   ;;  %s1006_s18 = smov 0  }
   0x6   :  { %s1008_s19 = smov 0   ;;  %s1010_s20 = smov 0  }
   0x7 LB: > { %s33_s21 = sadd.s32 1, %s961_s19  ;;  %s66_s22 = sadd.s32 1, %s953_s17  ;;  %s965_s20 = sphi %s1010_s20, %s21_s20   ;;  %s961_s19 = sphi %s1008_s19, %s1321_s19   ;;  %s957_s18 = sphi %s1006_s18, %s1320_s18   ;;  %s953_s17 = sphi %s1004_s17, %s1319_s17   ;;  %s949_s16 = sphi %s1002_s16, %s1318_s16   ;;  %s945_s15 = sphi %s1000_s15, %s1317_s15  }
   0x8   : > { %p35_p0 = scmp.ge.s32.totalorder %s33_s21, 2  ;;  %p73_p1 = scmp.ne.s32.totalorder %s953_s17, %s949_s16 }
   0x9   : > { %p74_p2 = scmp.eq.s32.totalorder %s965_s20, 0  ;;  %p735_p6 = scmp.lt.s32.totalorder %s965_s20, 2 }
   0xa   : > { %s1323_s21 = smov (%p35_p0, %s33_s21), 0  ;;  %s199_s25 = sand.u32 1, %s965_s20  }
   0xb   : > { %p1040_p3 = por %p74_p2, %p73_p1  ;;  %s63_s24 = ssub.s32 %s961_s19, %s1323_s21 }
   0xc   : > { %p64_p5 = scmp.eq.s32.totalorder %s63_s24, 0  ;;  %s201_s26 = sand.u32 1, %s953_s17  }
   0xd   : > { %s1053_s28 = sshll.u32 %s201_s26, 5  ;;  %s656_s29 = sshll.u32 %s961_s19, 9 }
   0xe   : > { %s1051_s27 = scalar_select %p64_p5, %s953_s17, %s66_s22  }
   0xf   : > { %s1059_s6 = scalar_lea.hbm %s1290_s1, %s656_s29  ;;  %s203_s7 = scalar_lea.vmem [#allocation5], %s1053_s28 }
  0x10   : > { %s210_s8 = sshll.u32 %s203_s7, 4  ;;  %p1066_p7 = pnand %p735_p6, %p1040_p3  ;;  %s1062_s8 = int_to_ptr.vmem [resolvable:$true] %s210_s8 }
  0x11   : > { %s1073_s12 = scalar_lea.hbm %s1291_s2, %s656_s29  ;;  %s1075_s13 = scalar_lea.sflag [#allocation6], %s199_s25 }
  0x12   : > { %s791_s14 = scalar_lea.hbm %s1059_s6, 512  ;;  %p793_p9 = pneg %p1066_p7 }
  0x13   : > { %p792_p8 = scmp.ne.s32.totalorder %s1059_s6, %s791_s14  ;;  %s796_s24 = scalar_lea.hbm %s1290_s1, 1024 }
  0x14   : > { %p797_p12 = scmp.lt.u32.totalorder %s1059_s6, %s1290_s1  ;;  %p798_p13 = scmp.lt.u32.totalorder %s796_s24, %s791_s14 }
  0x15   : > { %p794_p10 = pnand %p793_p9, %p792_p8  ;;  %p800_p2 = scmp.lt.u32.totalorder %s791_s14, %s1059_s6 }
  0x16   : > { %p799_p0 = por %p798_p13, %p797_p12 }
  0x17   : > { %p795_p11 = pneg %p794_p10 }
  0x18   : > { %p801_p3 = por %p800_p2, %p799_p0 }
  0x1a   : > { %p802_p5 = pnand %p801_p3, %p795_p11 }
  0x1c   : > { %805 = shalt.err (!%p802_p5)
}
  0x1d   : > { %s806_s25 = scalar_lea.vmem %s1062_s8, 512  ;;  %s967_s29 = smov [#allocation5]  }
  0x1e   : > { %p807_p6 = scmp.ne.s32.totalorder %s1062_s8, %s806_s25  ;;  %s811_s5 = sshll.u32 %s967_s29, 4  ;;  %s812_s5 = int_to_ptr.vmem [resolvable:$false] %s811_s5 }
  0x1f   : > { %s813_s7 = scalar_lea.vmem %s812_s5, 1024  ;;  %p814_p4 = scmp.lt.s32.totalorder %s1062_s8, %s812_s5 }
  0x20   : > { %p809_p8 = pnand %p807_p6, %p793_p9  ;;  %p815_p12 = scmp.lt.s32.totalorder %s813_s7, %s806_s25 }
  0x22   : > { %p810_p10 = pneg %p809_p8  ;;  %p816_p13 = por %p815_p12, %p814_p4 }
  0x24   : > { %p817_p0 = pnand %p816_p13, %p810_p10 }
  0x26   : > { %820 = shalt.err (!%p817_p0)
}
  0x27   : > { %s1294_s10 = smov 128   ;;  %s969_s11 = smov 8  }
  0x28   : > { %726 = dma.hbm_to_vmem [thread:$0]  (!%p1066_p7), %s1059_s6, 512, %s1062_s8, %s1075_s13, %s1294_s10, %s1294_s10, %s969_s11  }
  0x29   : > { %s224_s14 = scalar_lea.vmem [#allocation7], %s1053_s28  ;;  %s1108_s23 = sadd.s32 4294967295, %s965_s20  }
  0x2a   : > { %s231_s22 = sshll.u32 %s224_s14, 4  ;;  %s629_s24 = sadd.s32 4294967294, %s965_s20   ;;  %s1134_s22 = int_to_ptr.vmem [resolvable:$true] %s231_s22 }
  0x2b   : > { %p79_p4 = scmp.ne.s32.totalorder %s949_s16, %s945_s15  ;;  %p1296_p11 = scmp.eq.s32.totalorder %s1108_s23, 0 }
  0x2c   : > { %p157_p2 = scmp.eq.s32.totalorder %s1108_s23, 1  ;;  %p163_p3 = scmp.eq.s32.totalorder %s629_s24, 1 }
  0x2d   : > { %p630_p5 = scmp.ge.s32.totalorder %s965_s20, 1  ;;  %p1118_p6 = por %p1296_p11, %p79_p4 }
  0x2e   : > { %p1125_p8 = por %p157_p2, %p73_p1  ;;  %p1129_p10 = por %p163_p3, %p79_p4 }
  0x2f   : > { %s1302_s6 = scalar_select %p1118_p6, 1, 0 }
  0x30   : > { %s1303_s28 = scalar_select %p1125_p8, 1, 0 }
  0x31   : > { %s1304_s8 = scalar_select %p1129_p10, 1, 0 }
  0x32   : > { %p170_p12 = scmp.lt.s32.totalorder %s965_s20, 3  ;;  %s970_s30 = smov [#allocation2]  }
  0x33   : > { %s1140_s25 = sshll.u32 %s970_s30, 4  ;;  %s821_s29 = scalar_lea.hbm %s1073_s12, 512  ;;  %s186_s25 = int_to_ptr.vmem [resolvable:$true] %s1140_s25 }
  0x34   : > { %p1136_p13 = pnand %p630_p5, %p170_p12  ;;  %p822_p0 = scmp.ne.s32.totalorder %s1073_s12, %s821_s29 }
  0x35   : > { %s826_s14 = scalar_lea.hbm %s1291_s2, 1024  ;;  %p827_p3 = scmp.lt.u32.totalorder %s1073_s12, %s1291_s2 }
  0x36   : > { %s1305_s26 = scalar_select %p1136_p13, 1, 0 }
  0x37   : > { %p824_p4 = pnand %p822_p0, %p793_p9  ;;  %p828_p5 = scmp.lt.u32.totalorder %s826_s14, %s821_s29 }
  0x38   : > { %p830_p11 = scmp.lt.u32.totalorder %s821_s29, %s1073_s12 }
  0x39   : > { %p825_p2 = pneg %p824_p4  ;;  %p829_p12 = por %p828_p5, %p827_p3 }
  0x3b   : > { %p831_p10 = por %p830_p11, %p829_p12 }
  0x3d   : > { %p832_p8 = pnand %p831_p10, %p825_p2 }
  0x3f   : > { %835 = shalt.err (!%p832_p8)
}
  0x40   : > { %s836_s30 = scalar_lea.vmem %s1134_s22, 512  ;;  %s971_s5 = smov [#allocation7]  }
  0x41   : > { %p837_p0 = scmp.ne.s32.totalorder %s1134_s22, %s836_s30  ;;  %s841_s7 = sshll.u32 %s971_s5, 4  ;;  %s842_s7 = int_to_ptr.vmem [resolvable:$false] %s841_s7 }
  0x42   : > { %s843_s10 = scalar_lea.vmem %s842_s7, 1024  ;;  %p844_p6 = scmp.lt.s32.totalorder %s1134_s22, %s842_s7 }
  0x43   : > { %p839_p4 = pnand %p837_p0, %p793_p9  ;;  %p845_p3 = scmp.lt.s32.totalorder %s843_s10, %s836_s30 }
  0x45   : > { %p840_p1 = pneg %p839_p4  ;;  %p846_p5 = por %p845_p3, %p844_p6 }
  0x47   : > { %p847_p11 = pnand %p846_p5, %p840_p1 }
  0x49   : > { %850 = shalt.err (!%p847_p11)
}
  0x4a   : > { %s1306_s29 = smov 128   ;;  %p1307_p9 = scmp.eq.s32.totalorder %s1108_s23, 0 }
  0x4b   : > { %729 = dma.hbm_to_vmem [thread:$0]  (!%p1066_p7), %s1073_s12, 512, %s1134_s22, %s1075_s13, %s1306_s29, %s1306_s29, %s969_s11  }
  0x4c   : > { %p1308_p8 = pneg %p1136_p13  ;;  %s851_s30 = scalar_lea.hbm %s1289_s0, 256 }
  0x4d   : > { %p852_p6 = scmp.ne.s32.totalorder %s1289_s0, %s851_s30  ;;  %p858_p12 = scmp.lt.u32.totalorder %s851_s30, %s1289_s0 }
  0x4e   : > { %p1177_p10 = pnand %p1308_p8, %p1307_p9 }
  0x50   : > { %p853_p1 = pneg %p1177_p10 }
  0x52   : > { %p854_p7 = pnand %p853_p1, %p852_p6 }
  0x54   : > { %p855_p2 = pneg %p854_p7 }
  0x56   : > { %p860_p0 = pnand %p858_p12, %p855_p2 }
  0x58   : > { %863 = shalt.err (!%p860_p0)
}
  0x59   : > { %s864_s22 = scalar_lea.vmem %s186_s25, 256  ;;  %p872_p11 = scmp.lt.s32.totalorder %s186_s25, %s186_s25 }
  0x5a   : > { %p865_p4 = scmp.ne.s32.totalorder %s186_s25, %s864_s22  ;;  %p873_p9 = scmp.lt.s32.totalorder %s864_s22, %s864_s22 }
  0x5c   : > { %p867_p3 = pnand %p865_p4, %p853_p1  ;;  %p874_p8 = por %p873_p9, %p872_p11 }
  0x5e   : > { %p868_p5 = pneg %p867_p3 }
  0x60   : > { %p875_p13 = pnand %p874_p8, %p868_p5 }
  0x62   : > { %878 = shalt.err (!%p875_p13)
}
  0x63   : > { %722 = dma.hbm_to_vmem [thread:$0]  (!%p1177_p10), %s1289_s0, 256, %s186_s25, [#allocation3], %s1306_s29, %s1306_s29, %s969_s11  }
  0x64   : > { %p1310_p6 = scmp.ne.s32.totalorder %s1305_s26, 0 }
  0x65   : > { %p1311_p1 = scmp.eq.s32.totalorder (!%p1310_p6), %s1108_s23, 0 }
  0x66   : > { %249 = sbr.rel (%p1310_p6) target bundleno = 357 (0x165), region = 36 }
  0x6d   : > { %932 = dma.done.wait (%p1311_p1), [#allocation3], 256   ;;  %p1312_p7 = pmov %p1311_p1 }
  0x6e   : > { %s255_s14 = sand.u32 1, %s1108_s23   ;;  %s257_s9 = sand.u32 1, %s949_s16  }
  0x6f   : > { %934 = vsyncadd (%p1312_p7), [#allocation3], 4294967040  ;;  %s1210_s30 = sshll.u32 %s257_s9, 5  ;;  %s256_s11 = scalar_lea.sflag [#allocation6], %s255_s14 }
  0x70   : > { %s259_s25 = scalar_lea.vmem [#allocation5], %s1210_s30  ;;  %p1313_p13 = scmp.ne.s32.totalorder %s1302_s6, 0 }
  0x72   : > { %936 = dma.done.wait (%p1313_p13), %s256_s11, 1024  }
  0x73   : > { %938 = vsyncadd (%p1313_p13), %s256_s11, 4294966272  ;;  %s268_s26 = scalar_lea.vmem [#allocation7], %s1210_s30  ;;  %v308_v2 = vld [vmem:[%s259_s25] sm:$0xff]  ;;  %vm312_vm0 = vcmask 261120   ;;  %v309_v4 = vld [vmem:[%s259_s25 + $0x8] sm:$0xff]  ;;  %p302_p10 = scmp.lt.s32.totalorder %s957_s18, 1 }
  0x74   : > { %v396_v0 = vld [vmem:[%s268_s26] sm:$0xff]  ;;  %v397_v1 = vld [vmem:[%s268_s26 + $0x8] sm:$0xff]  ;;  %v398_v5 = vld [vmem:[%s268_s26 + $0x10] sm:$0xff]  ;;  %v693_v7 = vpack.c.bf16 %v309_v4, %v308_v2  ;;  %s300_s7 = scalar_lea.vmem [#allocation8], %s1210_s30  ;;  %s658_s13 = sshll.u32 %s957_s18, 9 }
  0x75   : > { %v701_v3 = vpack.c.bf16 %v397_v1, %v396_v0  ;;  %v399_v6 = vld [vmem:[%s268_s26 + $0x18] sm:$0xff]  ;;  %v310_v9 = vld [vmem:[%s259_s25 + $0x10] sm:$0xff]  ;;  %s303_s23 = scalar_select %p302_p10, %s957_s18, 1 }
  0x76   : > { %v705_v8 = vpack.c.bf16 %v399_v6, %v398_v5  ;;  %v311_v10 = vld [vmem:[%s259_s25 + $0x18] sm:$0xff]  ;;  %v306_v11 = vld [vmem:[#allocation2] sm:$0xff]  ;;  %694 = vmatprep.subr.bf16.mxu0 %v693_v7  ;;  %s501_s12 = sshll.u32 %s300_s7, 4  ;;  %s1234_s24 = scalar_lea.hbm %s1293_s4, %s658_s13  ;;  %s1229_s12 = int_to_ptr.vmem [resolvable:$true] %s501_s12 }
  0x77   : > { %702 = vmatprep.subr.bf16.mxu1 %v701_v3  ;;  %v697_v12 = vpack.c.bf16 %v311_v10, %v310_v9  ;;  %690 = vmatprep.mubr.msk.f32.mxu1 %vm312_vm0, %v306_v11  ;;  %v307_v13 = vld [vmem:[#allocation2 + $0x8] sm:$0xff]  ;;  %s304_s5 = scalar_lea.vmem %s1292_s3, %s303_s23  ;;  %s1242_s18 = scalar_lea.sflag [#allocation4], %s257_s9 }
  0x78   : > { %704 = vmatpush3.bf16.msra.mxu1 %v701_v3  ;;  %696 = vmatpush3.bf16.msra.mxu0 %v693_v7  ;;  %v646_v14 = vld [vmem:[%s304_s5] ss:$0 sm:$0xff]  ;;  %s879_s14 = scalar_lea.vmem %s1229_s12, 512  ;;  %p1314_p12 = scmp.ne.s32.totalorder %s1303_s28, 0 }
  0x79   : > { %706 = vmatprep.subr.bf16.mxu1 %v705_v8  ;;  %698 = vmatprep.subr.bf16.mxu0 %v697_v12  ;;  %p880_p2 = scmp.ne.s32.totalorder %s1229_s12, %s879_s14  ;;  %s972_s30 = smov [#allocation8]  }
  0x7a   : > { %679 = vmatprep.mubr.msk.f32.mxu0 %vm312_vm0, %v306_v11  ;;  %s883_s11 = sshll.u32 %s972_s30, 4  ;;  %s884_s11 = int_to_ptr.vmem [resolvable:$false] %s883_s11 }
  0x7b   : > { %p881_p0 = pnand %p880_p2, %p1314_p12  ;;  %s885_s25 = scalar_lea.vmem %s884_s11, 1024 }
  0x7c   : > { %708 = vmatpush3.bf16.msra.mxu1 %v705_v8  ;;  %700 = vmatpush3.bf16.msra.mxu0 %v697_v12  ;;  %p886_p3 = scmp.lt.s32.totalorder %s1229_s12, %s884_s11  ;;  %p887_p5 = scmp.lt.s32.totalorder %s885_s25, %s879_s14 }
  0x7d   : > { %p882_p4 = pneg %p881_p0 }
  0x7e   : > { %p888_p11 = por %p887_p5, %p886_p3 }
  0x7f   : > { %691 = vmatmul.mubr.msk.f32.vlgmr.msra.gmra.mrb[0].mxu1 %vm312_vm0, %v307_v13  ;;  %680 = vmatmul.mubr.msk.f32.vlgmr.msra.gmra.mrb[0].mxu0 %vm312_vm0, %v307_v13 }
  0x80   : > { %p889_p9 = pnand %p888_p11, %p882_p4 }
 0x152   : > { %v692_v15 = vpop.f32.mrb[0].mxu1  ;;  %v681_v17 = vpop.f32.mrb[0].mxu0 }
 0x153   : > { %v479_v16 = vadd.f32 %v692_v15, %v646_v14  ;;  %v473_v18 = vpop.f32.mrb[1].mxu1  ;;  %395 = vst.msk [vmem:[%s300_s7 + $0x8] sm:$0xff] %vm312_vm0, %v681_v17  ;;  %v385_v20 = vpop.f32.mrb[1].mxu0 }
 0x154   : > { %v474_v19 = vadd.f32 %v646_v14, %v473_v18  ;;  %394 = vst.msk [vmem:[%s300_s7] sm:$0xff] %vm312_vm0, %v385_v20 }
 0x155   : > { %650 = vst.msk [vmem:[%s300_s7 + $0x18] sm:$0xff] %vm312_vm0, %v479_v16 }
 0x156   : > { %649 = vst.msk [vmem:[%s300_s7 + $0x10] sm:$0xff] %vm312_vm0, %v474_v19 }
 0x157   : > { %892 = shalt.err (!%p889_p9)
}
 0x158   : > { %s893_s9 = scalar_lea.hbm %s1234_s24, 512  ;;  %s897_s6 = scalar_lea.hbm %s1293_s4, 1024 }
 0x159   : > { %p894_p8 = scmp.ne.s32.totalorder %s1234_s24, %s893_s9  ;;  %p898_p7 = scmp.lt.u32.totalorder %s1234_s24, %s1293_s4 }
 0x15a   : > { %p899_p13 = scmp.lt.u32.totalorder %s897_s6, %s893_s9  ;;  %p901_p2 = scmp.lt.u32.totalorder %s893_s9, %s1234_s24 }
 0x15b   : > { %p895_p6 = pnand %p894_p8, %p1314_p12 }
 0x15c   : > { %p900_p10 = por %p899_p13, %p898_p7 }
 0x15d   : > { %p896_p1 = pneg %p895_p6 }
 0x15e   : > { %p902_p0 = por %p901_p2, %p900_p10 }
 0x160   : > { %p903_p4 = pnand %p902_p0, %p896_p1 }
 0x162   : > { %906 = shalt.err (!%p903_p4)
}
 0x163   : > { %s973_s7 = smov 128   ;;  %s974_s13 = smov 8  }
 0x164   : > { %717 = dma.vmem_to_hbm [thread:$0]  (%p1314_p12), %s1229_s12, 512, %s1234_s24, %s1242_s18, %s973_s7, %s973_s7, %s974_s13  }
 0x165 PF: > { %s516_s22 = sand.u32 1, %s945_s15   ;;  %p1315_p3 = scmp.ne.s32.totalorder %s1304_s8, 0 }
 0x166   : > { %p1316_p5 = scmp.ge.s32.totalorder %s965_s20, 2  ;;  %s517_s10 = scalar_lea.sflag [#allocation4], %s516_s22 }
 0x168   : > { %p731_p11 = pnand %p1316_p5, %p1315_p3 }
 0x16a   : > { %940 = dma.done.wait (!%p731_p11), %s517_s10, 512  }
 0x16b   : > { %942 = vsyncadd (!%p731_p11), %s517_s10, 4294966784  ;;  %s21_s20 = sadd.s32 1, %s965_s20   ;;  %s1317_s15 = smov %s949_s16 }
 0x16c   : > { %p18_p9 = scmp.ge.s32.totalorder %s21_s20, 4   ;;  %s1318_s16 = smov %s953_s17 }
 0x16d   : > { %s1319_s17 = smov %s1051_s27  ;;  %s1320_s18 = smov %s961_s19 }
 0x16e   : > { %s1321_s19 = smov %s1323_s21  ;;  %20 = sbr.rel (!%p18_p9) target bundleno = 7 (0x7), region = 102 }
 0x175   :  { %522 = vsyncpa [#allocation3], 1 }
 0x176   :  { %524 = vsyncpa [#allocation3 + $0x1], 1 }
 0x177   :  { %525 = vsyncpa [#allocation6], 1 }
 0x178   :  { %527 = vsyncpa [#allocation6 + $0x1], 1 }
 0x179   :  { %528 = vsyncpa [#allocation4], 1 }
 0x17a   :  { %530 = vsyncpa [#allocation4 + $0x1], 1 }

</bundles_post_ra>
